<compile_context>
chip_gen: v7x
topology: tpu7x:2x2x1
jax: 0.10.0
libtpu: 0.0.40
codegen_flags: <defaults>
</compile_context>

<pallas_src>
import functools

import jax
import jax.numpy as jnp
from jax import lax
from jax.experimental import pallas as pl
from jax.experimental.pallas import tpu as pltpu


# ------------------------------ Pallas kernel -------------------------------

def _conv_kernel(x_ref, w_ref, b_ref, o_ref, *, k, s, Hq, TH, Wo, Cin):
    """One (batch, output-row-tile) step of the fused im2col convolution.

    x_ref : (1, s*s*Hq, Wq, Cin)  phase-split, reflection-padded image (NHWC)
    w_ref : (Cout, k*k*Cin)       conv weights, tap-major along K
    b_ref : (Cout, 1)             bias (f32)
    o_ref : (1, Cout, TH*Wo)      output tile: channels on sublanes, spatial
                                  (lane-dense) on lanes, NCHW order.
    """
    t = pl.program_id(1)
    r_base = pl.multiple_of(t * TH, TH)          # first output row of this tile

    # Build the im2col block in VMEM: k*k shifted slices concatenated along the
    # channel (lane / contraction) axis -> (TH, Wo, k*k*Cin).
    taps = []
    for kh in range(k):
        for kw in range(k):
            ph = (kh % s) * s + (kw % s)          # stride phase of this tap
            r0 = ph * Hq + kh // s                # row offset inside that phase
            c0 = kw // s
            taps.append(x_ref[0, pl.ds(r_base + r0, TH), pl.ds(c0, Wo), :])
    patch = jnp.concatenate(taps, axis=-1)        # (TH, Wo, k*k*Cin)
    # Merge the two leading dims (lane dim unchanged -> cheap reshape).
    patch = patch.reshape(TH * Wo, k * k * Cin)   # (M, K)

    # One MXU dot, K = k*k*Cin deep, result directly in (Cout, spatial):
    # acc[co, m] = sum_K w[co, K] * patch[m, K]       (A @ B^T form)
    acc = lax.dot_general(w_ref[...], patch,
                          (((1,), (1,)), ((), ())),
                          preferred_element_type=jnp.float32)   # (Cout, TH*Wo)
    acc = acc + b_ref[...]                        # (Cout, 1) broadcast over lanes
    o_ref[0] = acc.astype(o_ref.dtype)            # lane-dense, NCHW-ordered store


# -------------------------------- helpers ------------------------------------

def _phase_split(xp, s):
    """(N, Hp, Wp, C) -> (N, s*s, Hq, Wq, C); phase (ph,pw) = xp[:, ph::s, pw::s].

    Single copy pass; lets the kernel use contiguous slices for strided convs.
    For s == 1 it is just a reshape.
    """
    if s == 1:
        return xp[:, None]
    N, Hp, Wp, C = xp.shape
    Hq = -(-Hp // s)
    Wq = -(-Wp // s)
    phases = []
    for ph in range(s):
        for pw in range(s):
            t = xp[:, ph::s, pw::s, :]
            t = jnp.pad(t, ((0, 0), (0, Hq - t.shape[1]),
                            (0, Wq - t.shape[2]), (0, 0)))
            phases.append(t)
    return jnp.stack(phases, axis=1)


def _pick_row_tile(Ho, Wo):
    """Output-row tile TH: divides Ho; TH*Wo is a multiple of 128 (lane-dense
    stores) unless a single tile covers the whole output; M = TH*Wo capped so
    the f32 accumulator stays small."""
    valid = [t for t in range(1, Ho) if Ho % t == 0 and (t * Wo) % 128 == 0]
    if not valid:
        return Ho
    good = [t for t in valid if t * Wo <= 2048]
    return good[-1] if good else valid[0]


# -------------------------------- wrapper ------------------------------------

def conv_layer_forward(x_nchw, weight, bias, *, stride,
                       compute_dtype=jnp.bfloat16):
    """ConvLayer.forward: ReflectionPad2d(k//2) + Conv2d(k, stride).

    x_nchw : (N, Cin, H, W)      PyTorch layout
    weight : (Cout, Cin, k, k)   PyTorch Conv2d layout
    bias   : (Cout,)
    returns: (N, Cout, Ho, Wo)   PyTorch layout, float32
    """
    N, Cin, H, W = x_nchw.shape
    Cout, Cin_w, k, k2 = weight.shape
    assert Cin == Cin_w and k == k2
    s = int(stride)
    p = k // 2

    # XLA glue (fused copy passes): layout, reflection pad, phase split, cast.
    x = jnp.transpose(x_nchw, (0, 2, 3, 1))                       # NHWC
    xp = jnp.pad(x, ((0, 0), (p, p), (p, p), (0, 0)), mode="reflect")
    Hp, Wp = H + 2 * p, W + 2 * p
    Ho = (Hp - k) // s + 1
    Wo = (Wp - k) // s + 1
    xph = _phase_split(xp, s)                                     # (N, s*s, Hq, Wq, Cin)
    Hq, Wq = xph.shape[2], xph.shape[3]
    xph = xph.reshape(N, s * s * Hq, Wq, Cin).astype(compute_dtype)

    # PyTorch (Cout, Cin, kh, kw) -> (Cout, k*k*Cin), tap-major / channel-minor,
    # matching the in-kernel concat order.
    KK = k * k * Cin
    w2 = jnp.transpose(weight, (0, 2, 3, 1)).reshape(Cout, KK).astype(compute_dtype)
    b2 = bias.reshape(Cout, 1).astype(jnp.float32)

    TH = _pick_row_tile(Ho, Wo)
    n_tiles = Ho // TH

    # VMEM budget: double-buffered input block + output tile + params.
    isz = jnp.dtype(compute_dtype).itemsize
    need = (2 * (s * s * Hq * Wq * Cin * isz + Cout * TH * Wo * 4)
            + Cout * KK * isz + Cout * 4)
    vmem_limit = int(min(64 << 20, max(16 << 20, 4 * need)))

    out = pl.pallas_call(
        functools.partial(_conv_kernel, k=k, s=s, Hq=Hq, TH=TH, Wo=Wo, Cin=Cin),
        out_shape=jax.ShapeDtypeStruct((N, Cout, Ho * Wo), jnp.float32),
        grid=(N, n_tiles),
        in_specs=[
            # Whole phase-split image per batch element; block index depends
            # only on n, so it stays VMEM-resident across the spatial steps.
            pl.BlockSpec((1, s * s * Hq, Wq, Cin), lambda n, t: (n, 0, 0, 0)),
            pl.BlockSpec((Cout, KK), lambda n, t: (0, 0)),
            pl.BlockSpec((Cout, 1), lambda n, t: (0, 0)),
        ],
        out_specs=pl.BlockSpec((1, Cout, TH * Wo), lambda n, t: (n, 0, t)),
        compiler_params=pltpu.CompilerParams(
            dimension_semantics=("parallel", "parallel"),
            vmem_limit_bytes=vmem_limit),
    )(xph, w2, b2)

    return out.reshape(N, Cout, Ho, Wo)


# ------------------------------- reference -----------------------------------

def _reference(x_nchw, weight, bias, *, stride):
    k = weight.shape[-1]
    p = k // 2
    xp = jnp.pad(x_nchw, ((0, 0), (0, 0), (p, p), (p, p)), mode="reflect")
    out = lax.conv_general_dilated(
        xp, weight, window_strides=(stride, stride), padding="VALID",
        dimension_numbers=("NCHW", "OIHW", "NCHW"),
        precision=lax.Precision.HIGHEST)
    return out + bias[None, :, None, None]


# ---------------------------------- main --------------------------------------

if __name__ == "__main__":
    key = jax.random.PRNGKey(0)
    kx, kw, kb = jax.random.split(key, 3)

    # Small shapes consistent with the module: batch=2, 8->16 channels, 16x16.
    N, Cin, H, W = 2, 8, 16, 16
    Cout, ksize = 16, 3
    x = jax.random.normal(kx, (N, Cin, H, W), jnp.float32)
    fan_in = Cin * ksize * ksize
    bound = 1.0 / float(fan_in) ** 0.5            # PyTorch Conv2d default init
    weight = jax.random.uniform(kw, (Cout, Cin, ksize, ksize), jnp.float32,
                                -bound, bound)
    bias = jax.random.uniform(kb, (Cout,), jnp.float32, -bound, bound)

    for stride in (2, 1):                         # ConvLayer(8, 16, 3, stride)
        ref = _reference(x, weight, bias, stride=stride)
        Ho = (H + 2 * (ksize // 2) - ksize) // stride + 1
        for dt, tol in ((jnp.float32, 1e-2), (jnp.bfloat16, 5e-2)):
            fwd = jax.jit(functools.partial(conv_layer_forward,
                                            stride=stride, compute_dtype=dt))
            out = fwd(x, weight, bias)
            jax.block_until_ready(out)
            assert out.shape == (N, Cout, Ho, Ho), out.shape
            assert out.dtype == jnp.float32
            err = float(jnp.max(jnp.abs(out - ref)))
            assert err < tol, f"stride={stride} dtype={dt} max|diff|={err}"

    print("KERNEL_OK")
</pallas_src>

<mosaic_0001>
module attributes {stable_mosaic.version = 11 : i64} {
  func.func @_conv_kernel(%arg0: i32, %arg1: i32, %arg2: memref<1x36x9x8xf32, #tpu.memory_space<vmem>>, %arg3: memref<16x72xf32, #tpu.memory_space<vmem>>, %arg4: memref<16x1xf32, #tpu.memory_space<vmem>>, %arg5: memref<1x16x64xf32, #tpu.memory_space<vmem>>) attributes {dimension_semantics = [#tpu.dimension_semantics<parallel>, #tpu.dimension_semantics<parallel>], iteration_bounds = array<i64: 2, 1>, scalar_prefetch = 0 : i64, scratch_operands = 0 : i64, tpu.core_type = #tpu.core_type<tc>, window_params = [{transform_indices = @transform_0, window_bounds = array<i64: 1, 36, 9, 8>}, {pipeline_mode = #tpu.pipeline_mode<synchronous>, transform_indices = @transform_1, window_bounds = array<i64: 16, 72>}, {pipeline_mode = #tpu.pipeline_mode<synchronous>, transform_indices = @transform_2, window_bounds = array<i64: 16, 1>}, {transform_indices = @transform_3, window_bounds = array<i64: 1, 16, 64>}]} {
    %c8_i32 = arith.constant 8 : i32
    %0 = arith.muli %arg1, %c8_i32 : i32
    %1 = tpu.assume_multiple %0, 8 : i32
    %c0_i32 = arith.constant 0 : i32
    %2 = arith.addi %1, %c0_i32 : i32
    %c0 = arith.constant 0 : index
    %3 = arith.index_cast %2 : i32 to index
    %c0_0 = arith.constant 0 : index
    %c0_1 = arith.constant 0 : index
    %4 = vector.load %arg2[%c0, %3, %c0_0, %c0_1] : memref<1x36x9x8xf32, #tpu.memory_space<vmem>>, vector<1x8x8x8xf32>
    %5 = vector.shape_cast %4 : vector<1x8x8x8xf32> to vector<8x8x8xf32>
    %c9_i32 = arith.constant 9 : i32
    %6 = arith.addi %1, %c9_i32 : i32
    %c0_2 = arith.constant 0 : index
    %7 = arith.index_cast %6 : i32 to index
    %c0_3 = arith.constant 0 : index
    %c0_4 = arith.constant 0 : index
    %8 = vector.load %arg2[%c0_2, %7, %c0_3, %c0_4] : memref<1x36x9x8xf32, #tpu.memory_space<vmem>>, vector<1x8x8x8xf32>
    %9 = vector.shape_cast %8 : vector<1x8x8x8xf32> to vector<8x8x8xf32>
    %c0_i32_5 = arith.constant 0 : i32
    %10 = arith.addi %1, %c0_i32_5 : i32
    %c0_6 = arith.constant 0 : index
    %11 = arith.index_cast %10 : i32 to index
    %c1 = arith.constant 1 : index
    %c0_7 = arith.constant 0 : index
    %12 = vector.load %arg2[%c0_6, %11, %c1, %c0_7] : memref<1x36x9x8xf32, #tpu.memory_space<vmem>>, vector<1x8x8x8xf32>
    %13 = vector.shape_cast %12 : vector<1x8x8x8xf32> to vector<8x8x8xf32>
    %c18_i32 = arith.constant 18 : i32
    %14 = arith.addi %1, %c18_i32 : i32
    %c0_8 = arith.constant 0 : index
    %15 = arith.index_cast %14 : i32 to index
    %c0_9 = arith.constant 0 : index
    %c0_10 = arith.constant 0 : index
    %16 = vector.load %arg2[%c0_8, %15, %c0_9, %c0_10] : memref<1x36x9x8xf32, #tpu.memory_space<vmem>>, vector<1x8x8x8xf32>
    %17 = vector.shape_cast %16 : vector<1x8x8x8xf32> to vector<8x8x8xf32>
    %c27_i32 = arith.constant 27 : i32
    %18 = arith.addi %1, %c27_i32 : i32
    %c0_11 = arith.constant 0 : index
    %19 = arith.index_cast %18 : i32 to index
    %c0_12 = arith.constant 0 : index
    %c0_13 = arith.constant 0 : index
    %20 = vector.load %arg2[%c0_11, %19, %c0_12, %c0_13] : memref<1x36x9x8xf32, #tpu.memory_space<vmem>>, vector<1x8x8x8xf32>
    %21 = vector.shape_cast %20 : vector<1x8x8x8xf32> to vector<8x8x8xf32>
    %c18_i32_14 = arith.constant 18 : i32
    %22 = arith.addi %1, %c18_i32_14 : i32
    %c0_15 = arith.constant 0 : index
    %23 = arith.index_cast %22 : i32 to index
    %c1_16 = arith.constant 1 : index
    %c0_17 = arith.constant 0 : index
    %24 = vector.load %arg2[%c0_15, %23, %c1_16, %c0_17] : memref<1x36x9x8xf32, #tpu.memory_space<vmem>>, vector<1x8x8x8xf32>
    %25 = vector.shape_cast %24 : vector<1x8x8x8xf32> to vector<8x8x8xf32>
    %c1_i32 = arith.constant 1 : i32
    %26 = arith.addi %1, %c1_i32 : i32
    %c0_18 = arith.constant 0 : index
    %27 = arith.index_cast %26 : i32 to index
    %c0_19 = arith.constant 0 : index
    %c0_20 = arith.constant 0 : index
    %28 = vector.load %arg2[%c0_18, %27, %c0_19, %c0_20] : memref<1x36x9x8xf32, #tpu.memory_space<vmem>>, vector<1x8x8x8xf32>
    %29 = vector.shape_cast %28 : vector<1x8x8x8xf32> to vector<8x8x8xf32>
    %c10_i32 = arith.constant 10 : i32
    %30 = arith.addi %1, %c10_i32 : i32
    %c0_21 = arith.constant 0 : index
    %31 = arith.index_cast %30 : i32 to index
    %c0_22 = arith.constant 0 : index
    %c0_23 = arith.constant 0 : index
    %32 = vector.load %arg2[%c0_21, %31, %c0_22, %c0_23] : memref<1x36x9x8xf32, #tpu.memory_space<vmem>>, vector<1x8x8x8xf32>
    %33 = vector.shape_cast %32 : vector<1x8x8x8xf32> to vector<8x8x8xf32>
    %c1_i32_24 = arith.constant 1 : i32
    %34 = arith.addi %1, %c1_i32_24 : i32
    %c0_25 = arith.constant 0 : index
    %35 = arith.index_cast %34 : i32 to index
    %c1_26 = arith.constant 1 : index
    %c0_27 = arith.constant 0 : index
    %36 = vector.load %arg2[%c0_25, %35, %c1_26, %c0_27] : memref<1x36x9x8xf32, #tpu.memory_space<vmem>>, vector<1x8x8x8xf32>
    %37 = vector.shape_cast %36 : vector<1x8x8x8xf32> to vector<8x8x8xf32>
    %38 = tpu.concatenate %5, %9, %13, %17, %21, %25, %29, %33, %37 in 2 : vector<8x8x8xf32>, vector<8x8x8xf32>, vector<8x8x8xf32>, vector<8x8x8xf32>, vector<8x8x8xf32>, vector<8x8x8xf32>, vector<8x8x8xf32>, vector<8x8x8xf32>, vector<8x8x8xf32> -> vector<8x8x72xf32>
    %39 = vector.shape_cast %38 : vector<8x8x72xf32> to vector<64x72xf32>
    %c0_28 = arith.constant 0 : index
    %c0_29 = arith.constant 0 : index
    %40 = vector.load %arg3[%c0_28, %c0_29] : memref<16x72xf32, #tpu.memory_space<vmem>>, vector<16x72xf32>
    %cst = arith.constant dense<0.000000e+00> : vector<16x64xf32>
    %41 = tpu.matmul %40, %39, %cst {dimension_numbers = #tpu.dot_dimension_numbers<[1], [1], [0], [0], [0, 0, 1, 0], [], []>} : vector<16x72xf32>, vector<64x72xf32>, vector<16x64xf32> -> vector<16x64xf32>
    %c0_30 = arith.constant 0 : index
    %c0_31 = arith.constant 0 : index
    %42 = vector.load %arg4[%c0_30, %c0_31] : memref<16x1xf32, #tpu.memory_space<vmem>>, vector<16x1xf32>
    %43 = vector.broadcast %42 : vector<16x1xf32> to vector<16x64xf32>
    %44 = arith.addf %41, %43 : vector<16x64xf32>
    %c0_32 = arith.constant 0 : index
    %c0_33 = arith.constant 0 : index
    %c0_34 = arith.constant 0 : index
    %45 = vector.load %arg5[%c0_32, %c0_33, %c0_34] : memref<1x16x64xf32, #tpu.memory_space<vmem>>, vector<1x16x64xf32>
    %46 = vector.shape_cast %45 : vector<1x16x64xf32> to vector<16x64xf32>
    %47 = vector.shape_cast %44 : vector<16x64xf32> to vector<1x16x64xf32>
    tpu.vector_store %arg5[%c0_32, %c0_33, %c0_34], %47 {strides = array<i32>} : memref<1x16x64xf32, #tpu.memory_space<vmem>>, vector<1x16x64xf32>,
    return
  }
  func.func @transform_0(%arg0: i32, %arg1: i32) -> (i32, i32, i32, i32) {
    %c0_i32 = arith.constant 0 : i32
    %c0_i32_0 = arith.constant 0 : i32
    %c0_i32_1 = arith.constant 0 : i32
    %c0_i32_2 = arith.constant 0 : i32
    return %arg0, %c0_i32, %c0_i32_0, %c0_i32_1 : i32, i32, i32, i32
  }
  func.func @transform_1(%arg0: i32, %arg1: i32) -> (i32, i32) {
    %c0_i32 = arith.constant 0 : i32
    %c0_i32_0 = arith.constant 0 : i32
    %c0_i32_1 = arith.constant 0 : i32
    return %c0_i32, %c0_i32_0 : i32, i32
  }
  func.func @transform_2(%arg0: i32, %arg1: i32) -> (i32, i32) {
    %c0_i32 = arith.constant 0 : i32
    %c0_i32_0 = arith.constant 0 : i32
    %c0_i32_1 = arith.constant 0 : i32
    return %c0_i32, %c0_i32_0 : i32, i32
  }
  func.func @transform_3(%arg0: i32, %arg1: i32) -> (i32, i32, i32) {
    %c0_i32 = arith.constant 0 : i32
    %c0_i32_0 = arith.constant 0 : i32
    return %arg0, %c0_i32, %arg1 : i32, i32, i32
  }
}

</mosaic_0001>

<bundles_post_ra>
// kernel: conv_layer_forward.1
= control target key start
LH: loop header
LB: loop body
LE: loop exit
PB: predicated region body
PF: predicated region fallthrough
CT: control target
= control target key end

     0   :  { %s1209_s12 = smov 0   ;;  %s1211_s13 = smov 0   ;;  %s1461_s0 = inlined_call_operand.vmem [shape: f32[2,36,9,8], index: 0, kind: input, shape index: {}]   ;;  %s1462_s1 = inlined_call_operand.vmem [shape: f32[16,72], index: 1, kind: input, shape index: {}]   ;;  %s1463_s2 = inlined_call_operand.vmem [shape: f32[16,1], index: 2, kind: input, shape index: {}]   ;;  %s1464_s3 = inlined_call_operand.vmem [shape: f32[2,16,64], index: 3, kind: output, shape index: {}]  }
   0x1   :  { %s1213_s14 = smov 0  }
   0x2 LB: > { %s25_s15 = sadd.s32 1, %s1174_s13  ;;  %p834_p0 = scmp.ge.s32.totalorder %s1178_s14, 1  ;;  %s1178_s14 = sphi %s1213_s14, %s13_s14   ;;  %s1174_s13 = sphi %s1211_s13, %s1468_s13   ;;  %s1170_s12 = sphi %s1209_s12, %s1467_s12  }
   0x3   : > { %p27_p1 = scmp.ge.s32.totalorder %s25_s15, 2  ;;  %p151_p2 = scmp.lt.s32.totalorder %s1178_s14, 3 }
   0x5   : > { %s1470_s15 = smov (%p27_p1, %s25_s15), 0  ;;  %p152_p3 = pnand %p834_p0, %p151_p2 }
   0x6   : > { %p178_p4 = scmp.lt.s32.totalorder (!%p152_p3), %s1170_s12, 1  ;;  %s1180_s20 = smov (!%p152_p3), 8   ;;  %vm623_vm0 = vcmask (!%p152_p3), 588800   ;;  %vm537_vm1 = vcmask (!%p152_p3), 64512   ;;  %vm546_vm2 = vcmask (!%p152_p3), 130048   ;;  %vm555_vm3 = vcmask (!%p152_p3), 195584  }
   0x7   : > { %155 = sbr.rel (%p152_p3) target bundleno = 426 (0x1aa), region = 32  ;;  %s1181_s21 = smov (!%p152_p3), 24   ;;  %vm564_vm4 = vcmask (!%p152_p3), 261120   ;;  %vm573_vm5 = vcmask (!%p152_p3), 326656   ;;  %vm582_vm6 = vcmask (!%p152_p3), 392192   ;;  %vm591_vm7 = vcmask (!%p152_p3), 457728   ;;  %vm1368_vm9 = vmpackc.low (!%p152_p3), %vm623_vm0, %vm623_vm0 }
   0x8   : > { %s1182_s22 = smov (!%p152_p3), 16   ;;  %s1183_s23 = smov (!%p152_p3), 32   ;;  %vm600_vm8 = vcmask (!%p152_p3), 523264  }
   0x9   : > { %s1184_s24 = smov (!%p152_p3), 40   ;;  %s1185_s25 = smov (!%p152_p3), 48  }
   0xa   : > { %s1186_s26 = smov (!%p152_p3), 56   ;;  %s1187_s27 = smov (!%p152_p3), 64  }
   0xe   : > { %s1472_s12 = smov (!%p178_p4, %s1170_s12), 1 }
   0xf   : > { %s960_s16 = smul.u32 576, %s1472_s12  ;;  %s906_s9 = sshll.u32 %s1472_s12, 4 }
  0x11   : > { %s1233_s19 = scalar_lea.vmem %s1461_s0, %s960_s16  ;;  %s190_s16 = scalar_lea.vmem %s1464_s3, %s906_s9 }
  0x12   : > { %v838_v0 = vld [vmem:[%s1233_s19 + $0x90] sm:$0xff]  ;;  %v839_v1 = vld [vmem:[%s1233_s19 + $0xa0] sm:$0xff] }
  0x13   : > { %v846_v2 = vld [vmem:[%s1233_s19 + $0x120] sm:$0xff]  ;;  %v994_v3 = vpack.i.bf16 %v839_v1, %v838_v0  ;;  %v847_v4 = vld [vmem:[%s1233_s19 + $0x130] sm:$0xff] }
  0x14   : > { %v213_v5 = vld [vmem:[%s1233_s19 + $0x1] sm:$0xff]  ;;  %v214_v6 = vld [vmem:[%s1233_s19 + $0x11] sm:$0xff]  ;;  %v1004_v7 = vpack.i.bf16 %v847_v4, %v846_v2 }
  0x15   : > { %v854_v8 = vld [vmem:[%s1233_s19 + $0x1b0] sm:$0xff]  ;;  %v855_v9 = vld [vmem:[%s1233_s19 + $0x1c0] sm:$0xff]  ;;  %995 = vrot.lane.b32.xlu0 %v994_v3, %s1180_s20  ;;  %v999_v10 = vpack.i.bf16 %v214_v6, %v213_v5 }
  0x16   : > { %1005 = vrot.lane.b32.xlu1 %v1004_v7, %s1181_s21  ;;  %v1009_v11 = vpack.i.bf16 %v855_v9, %v854_v8  ;;  %v862_v12 = vld [vmem:[%s1233_s19 + $0x121] sm:$0xff]  ;;  %v863_v13 = vld [vmem:[%s1233_s19 + $0x131] sm:$0xff] }
  0x17   : > { %v1248_v14 = vld [vmem:[%s1233_s19 + $0x10] sm:$0xff]  ;;  %v1251_v15 = vld [vmem:[%s1233_s19 + $0x20] sm:$0xff]  ;;  %v1014_v16 = vpack.i.bf16 %v863_v13, %v862_v12 }
  0x18   : > { %v1019_v17 = vpack.i.bf16 %v1251_v15, %v1248_v14  ;;  %v879_v18 = vld [vmem:[%s1233_s19 + $0xb0] sm:$0xff]  ;;  %v887_v19 = vld [vmem:[%s1233_s19 + $0x21] sm:$0xff] }
  0x19   : > { %1000 = vrot.lane.b32.xlu0 %v999_v10, %s1182_s22  ;;  %v1024_v20 = vpack.i.bf16 %v879_v18, %v839_v1  ;;  %v1029_v21 = vpack.i.bf16 %v887_v19, %v214_v6  ;;  %v841_v22 = vld [vmem:[%s1233_s19 + $0xc0] sm:$0xff]  ;;  %v216_v23 = vld [vmem:[%s1233_s19 + $0x31] sm:$0xff] }
  0x1a   : > { %1010 = vrot.lane.b32.xlu1 %v1009_v11, %s1183_s23  ;;  %v1034_v24 = vpack.i.bf16 %v841_v22, %v879_v18  ;;  %v1039_v25 = vpack.i.bf16 %v216_v23, %v887_v19  ;;  %v848_v26 = vld [vmem:[%s1233_s19 + $0x140] sm:$0xff]  ;;  %v849_v27 = vld [vmem:[%s1233_s19 + $0x150] sm:$0xff] }
  0x1b   : > { %v856_v28 = vld [vmem:[%s1233_s19 + $0x1d0] sm:$0xff]  ;;  %v857_v29 = vld [vmem:[%s1233_s19 + $0x1e0] sm:$0xff]  ;;  %v1044_v30 = vpack.i.bf16 %v849_v27, %v848_v26 }
  0x1c   : > { %v1049_v31 = vpack.i.bf16 %v857_v29, %v856_v28  ;;  %v864_v32 = vld [vmem:[%s1233_s19 + $0x141] sm:$0xff]  ;;  %v865_v33 = vld [vmem:[%s1233_s19 + $0x151] sm:$0xff] }
  0x1d   : > { %1015 = vrot.lane.b32.xlu0 %v1014_v16, %s1184_s24  ;;  %v1274_v34 = vld [vmem:[%s1233_s19 + $0x30] sm:$0xff]  ;;  %v1277_v35 = vld [vmem:[%s1233_s19 + $0x40] sm:$0xff]  ;;  %v1054_v36 = vpack.i.bf16 %v865_v33, %v864_v32 }
  0x1e   : > { %1020 = vrot.lane.b32.xlu1 %v1019_v17, %s1185_s25  ;;  %v1059_v37 = vpack.i.bf16 %v1277_v35, %v1274_v34  ;;  %v881_v38 = vld [vmem:[%s1233_s19 + $0xd0] sm:$0xff]  ;;  %v889_v39 = vld [vmem:[%s1233_s19 + $0x41] sm:$0xff] }
  0x1f   : > { %v1064_v40 = vpack.i.bf16 %v881_v38, %v841_v22  ;;  %v1069_v41 = vpack.i.bf16 %v889_v39, %v216_v23  ;;  %v843_v42 = vld [vmem:[%s1233_s19 + $0xe0] sm:$0xff]  ;;  %v218_v43 = vld [vmem:[%s1233_s19 + $0x51] sm:$0xff]  ;;  %v1188_v22 = vmov 0   ;;  %v612_v23 = vld [vmem:[%s1463_s2 + $0x8] sm:$0xff] }
  0x20   : > { %v1074_v44 = vpack.i.bf16 %v843_v42, %v881_v38  ;;  %v1079_v45 = vpack.i.bf16 %v218_v43, %v889_v39  ;;  %v850_v46 = vld [vmem:[%s1233_s19 + $0x160] sm:$0xff]  ;;  %v851_v47 = vld [vmem:[%s1233_s19 + $0x170] sm:$0xff]  ;;  %1155 = vset.pattern.permute.xlu1 %v1188_v22  ;;  %1154 = vset.pattern.permute.xlu0 %v1188_v22 }
  0x21   : > { %1025 = vrot.lane.b32.xlu0 %v1024_v20, %s1186_s26  ;;  %v858_v48 = vld [vmem:[%s1233_s19 + $0x1f0] sm:$0xff]  ;;  %v859_v49 = vld [vmem:[%s1233_s19 + $0x200] sm:$0xff]  ;;  %v1084_v50 = vpack.i.bf16 %v851_v47, %v850_v46 }
  0x22   : > { %1030 = vrot.lane.b32.xlu1 %v1029_v21, %s1187_s27  ;;  %v1089_v51 = vpack.i.bf16 %v859_v49, %v858_v48  ;;  %v866_v52 = vld [vmem:[%s1233_s19 + $0x161] sm:$0xff]  ;;  %v867_v53 = vld [vmem:[%s1233_s19 + $0x171] sm:$0xff] }
  0x23   : > { %v1300_v54 = vld [vmem:[%s1233_s19 + $0x50] sm:$0xff]  ;;  %v1303_v55 = vld [vmem:[%s1233_s19 + $0x60] sm:$0xff]  ;;  %v1094_v56 = vpack.i.bf16 %v867_v53, %v866_v52 }
  0x24   : > { %v1099_v57 = vpack.i.bf16 %v1303_v55, %v1300_v54  ;;  %v883_v58 = vld [vmem:[%s1233_s19 + $0xf0] sm:$0xff]  ;;  %v891_v59 = vld [vmem:[%s1233_s19 + $0x61] sm:$0xff] }
  0x25   : > { %1035 = vrot.lane.b32.xlu0 %v1034_v24, %s1180_s20  ;;  %v1104_v60 = vpack.i.bf16 %v883_v58, %v843_v42  ;;  %v1109_v61 = vpack.i.bf16 %v891_v59, %v218_v43  ;;  %v845_v62 = vld [vmem:[%s1233_s19 + $0x100] sm:$0xff]  ;;  %v220_v63 = vld [vmem:[%s1233_s19 + $0x71] sm:$0xff] }
  0x26   : > { %1040 = vrot.lane.b32.xlu1 %v1039_v25, %s1182_s22  ;;  %v1114_v0 = vpack.i.bf16 %v845_v62, %v883_v58  ;;  %v1119_v1 = vpack.i.bf16 %v220_v63, %v891_v59  ;;  %v852_v2 = vld [vmem:[%s1233_s19 + $0x180] sm:$0xff]  ;;  %v853_v3 = vld [vmem:[%s1233_s19 + $0x190] sm:$0xff] }
  0x27   : > { %v860_v4 = vld [vmem:[%s1233_s19 + $0x210] sm:$0xff]  ;;  %v861_v5 = vld [vmem:[%s1233_s19 + $0x220] sm:$0xff]  ;;  %v1124_v6 = vpack.i.bf16 %v853_v3, %v852_v2 }
  0x28   : > { %v1129_v7 = vpack.i.bf16 %v861_v5, %v860_v4  ;;  %v868_v8 = vld [vmem:[%s1233_s19 + $0x181] sm:$0xff]  ;;  %v869_v9 = vld [vmem:[%s1233_s19 + $0x191] sm:$0xff] }
  0x29   : > { %1045 = vrot.lane.b32.xlu0 %v1044_v30, %s1181_s21  ;;  %v1326_v10 = vld [vmem:[%s1233_s19 + $0x70] sm:$0xff]  ;;  %v877_v11 = vld [vmem:[%s1233_s19 + $0x80] sm:$0xff]  ;;  %v1134_v12 = vpack.i.bf16 %v869_v9, %v868_v8 }
  0x2a   : > { %1050 = vrot.lane.b32.xlu1 %v1049_v31, %s1183_s23  ;;  %v1139_v13 = vpack.i.bf16 %v877_v11, %v1326_v10  ;;  %v885_v16 = vld [vmem:[%s1233_s19 + $0x110] sm:$0xff]  ;;  %v893_v17 = vld [vmem:[%s1233_s19 + $0x81] sm:$0xff] }
  0x2b   : > { %v609_v18 = vld [vmem:[%s1462_s1] sm:$0xff]  ;;  %v1144_v19 = vpack.i.bf16 %v885_v16, %v845_v62  ;;  %v1149_v20 = vpack.i.bf16 %v893_v17, %v220_v63 }
  0x2c   : > { %933 = vmatprep.mubr.msk.f32.mxu0 %vm623_vm0, %v609_v18  ;;  %v611_v21 = vld [vmem:[%s1463_s2] sm:$0xff] }
  0x2d   : > { %1055 = vrot.lane.b32.xlu0 %v1054_v36, %s1184_s24  ;;  %v194_v28 = vld [vmem:[%s1233_s19] sm:$0xff] }
  0x2e   : > { %1060 = vrot.lane.b32.xlu1 %v1059_v37, %s1185_s25 }
  0x31   : > { %1065 = vrot.lane.b32.xlu0 %v1064_v40, %s1186_s26 }
  0x32   : > { %1070 = vrot.lane.b32.xlu1 %v1069_v41, %s1187_s27 }
  0x35   : > { %1075 = vrot.lane.b32.xlu0 %v1074_v44, %s1180_s20 }
  0x36   : > { %1080 = vrot.lane.b32.xlu1 %v1079_v45, %s1182_s22 }
  0x39   : > { %1085 = vrot.lane.b32.xlu0 %v1084_v50, %s1181_s21 }
  0x3a   : > { %1090 = vrot.lane.b32.xlu1 %v1089_v51, %s1183_s23 }
  0x3d   : > { %1095 = vrot.lane.b32.xlu0 %v1094_v56, %s1184_s24 }
  0x3e   : > { %1100 = vrot.lane.b32.xlu1 %v1099_v57, %s1185_s25 }
  0x41   : > { %1105 = vrot.lane.b32.xlu0 %v1104_v60, %s1186_s26 }
  0x42   : > { %1110 = vrot.lane.b32.xlu1 %v1109_v61, %s1187_s27 }
  0x45   : > { %1115 = vrot.lane.b32.xlu0 %v1114_v0, %s1180_s20 }
  0x46   : > { %1120 = vrot.lane.b32.xlu1 %v1119_v1, %s1182_s22 }
  0x49   : > { %1125 = vrot.lane.b32.xlu0 %v1124_v6, %s1181_s21 }
  0x4a   : > { %1130 = vrot.lane.b32.xlu1 %v1129_v7, %s1183_s23 }
  0x4d   : > { %1135 = vrot.lane.b32.xlu0 %v1134_v12, %s1184_s24 }
  0x4e   : > { %1140 = vrot.lane.b32.xlu1 %v1139_v13, %s1185_s25 }
  0x51   : > { %1145 = vrot.lane.b32.xlu0 %v1144_v19, %s1186_s26 }
  0x52   : > { %1150 = vrot.lane.b32.xlu1 %v1149_v20, %s1187_s27 }
  0x55   : > { %615 = vperm.xlu0 %1154, %v611_v21  }
  0x56   : > { %620 = vperm.xlu1 %1155, %v612_v23  }
  0x87   : > { %v996_v24 = vpop.permute.xlu0 %995 }
  0x88   : > { %v1006_v25 = vpop.permute.xlu1 %1005  ;;  %v998_v26 = vunpack.i.h.bf16 %v996_v24  ;;  %v997_v27 = vunpack.i.l.bf16 %v996_v24 }
  0x89   : > { %v1008_v30 = vunpack.i.h.bf16 %v1006_v25  ;;  %v1007_v31 = vunpack.i.l.bf16 %v1006_v25 }
  0x8a   : > { %v538_v37 = vsel %vm537_vm1, %v194_v28, %v997_v27  ;;  %v539_v38 = vsel %vm537_vm1, %v1248_v14, %v998_v26 }
  0x8b   : > { %v1001_v29 = vpop.permute.xlu0 %1000 }
  0x8c   : > { %v1003_v32 = vunpack.i.h.bf16 %v1001_v29  ;;  %v1002_v33 = vunpack.i.l.bf16 %v1001_v29  ;;  %v1011_v36 = vpop.permute.xlu1 %1010 }
  0x8d   : > { %v1013_v39 = vunpack.i.h.bf16 %v1011_v36  ;;  %v1012_v40 = vunpack.i.l.bf16 %v1011_v36 }
  0x8e   : > { %v547_v41 = vsel %vm546_vm2, %v538_v37, %v1002_v33  ;;  %v548_v42 = vsel %vm546_vm2, %v539_v38, %v1003_v32 }
  0x8f   : > { %v556_v43 = vsel %vm555_vm3, %v547_v41, %v1007_v31  ;;  %v557_v44 = vsel %vm555_vm3, %v548_v42, %v1008_v30  ;;  %v1016_v45 = vpop.permute.xlu0 %1015 }
  0x90   : > { %v565_v46 = vsel %vm564_vm4, %v556_v43, %v1012_v40  ;;  %v566_v47 = vsel %vm564_vm4, %v557_v44, %v1013_v39  ;;  %v1018_v48 = vunpack.i.h.bf16 %v1016_v45  ;;  %v1017_v49 = vunpack.i.l.bf16 %v1016_v45  ;;  %v1021_v50 = vpop.permute.xlu1 %1020 }
  0x91   : > { %v1023_v14 = vunpack.i.h.bf16 %v1021_v50  ;;  %v1022_v51 = vunpack.i.l.bf16 %v1021_v50 }
  0x92   : > { %v574_v52 = vsel %vm573_vm5, %v565_v46, %v1017_v49  ;;  %v575_v53 = vsel %vm573_vm5, %v566_v47, %v1018_v48 }
  0x93   : > { %v1026_v56 = vpop.permute.xlu0 %1025  ;;  %v583_v60 = vsel %vm582_vm6, %v574_v52, %v1022_v51  ;;  %v584_v61 = vsel %vm582_vm6, %v575_v53, %v1023_v14 }
  0x94   : > { %v1028_v57 = vunpack.i.h.bf16 %v1026_v56  ;;  %v1027_v58 = vunpack.i.l.bf16 %v1026_v56  ;;  %v1031_v59 = vpop.permute.xlu1 %1030 }
  0x95   : > { %v1033_v62 = vunpack.i.h.bf16 %v1031_v59  ;;  %v1032_v63 = vunpack.i.l.bf16 %v1031_v59 }
  0x96   : > { %v592_v0 = vsel %vm591_vm7, %v583_v60, %v1027_v58  ;;  %v593_v1 = vsel %vm591_vm7, %v584_v61, %v1028_v57 }
  0x97   : > { %v1036_v2 = vpop.permute.xlu0 %1035  ;;  %v601_v3 = vsel %vm600_vm8, %v592_v0, %v1032_v63  ;;  %v602_v4 = vsel %vm600_vm8, %v593_v1, %v1033_v62 }
  0x98   : > { %v1038_v6 = vunpack.i.h.bf16 %v1036_v2  ;;  %v1037_v7 = vunpack.i.l.bf16 %v1036_v2  ;;  %v1041_v8 = vpop.permute.xlu1 %1040  ;;  %v936_v9 = vpack.c.bf16 %v602_v4, %v601_v3 }
  0x99   : > { %v1043_v11 = vunpack.i.h.bf16 %v1041_v8  ;;  %v1042_v12 = vunpack.i.l.bf16 %v1041_v8 }
  0x9a   : > { %v540_v13 = vsel %vm537_vm1, %v1251_v15, %v1037_v7  ;;  %v541_v16 = vsel %vm537_vm1, %v1274_v34, %v1038_v6  ;;  %938 = vmatprep.subr.msk.bf16.mxu0 %vm1368_vm9, %v936_v9 }
  0x9b   : > { %v1046_v17 = vpop.permute.xlu0 %1045  ;;  %941 = vmatpush3.bf16.xpose.msk.msra.mxu0 %vm1368_vm9, %v936_v9  ;;  %v549_v21 = vsel %vm546_vm2, %v540_v13, %v1042_v12  ;;  %v550_v22 = vsel %vm546_vm2, %v541_v16, %v1043_v11 }
  0x9c   : > { %v1048_v18 = vunpack.i.h.bf16 %v1046_v17  ;;  %v1047_v19 = vunpack.i.l.bf16 %v1046_v17  ;;  %v1051_v20 = vpop.permute.xlu1 %1050 }
  0x9d   : > { %v1053_v23 = vunpack.i.h.bf16 %v1051_v20  ;;  %v1052_v24 = vunpack.i.l.bf16 %v1051_v20 }
  0x9e   : > { %v558_v15 = vsel %vm555_vm3, %v549_v21, %v1047_v19  ;;  %v559_v34 = vsel %vm555_vm3, %v550_v22, %v1048_v18 }
  0x9f   : > { %v1056_v25 = vpop.permute.xlu0 %1055  ;;  %v567_v29 = vsel %vm564_vm4, %v558_v15, %v1052_v24  ;;  %v568_v30 = vsel %vm564_vm4, %v559_v34, %v1053_v23 }
  0xa0   : > { %v1058_v26 = vunpack.i.h.bf16 %v1056_v25  ;;  %v1057_v27 = vunpack.i.l.bf16 %v1056_v25  ;;  %v1061_v28 = vpop.permute.xlu1 %1060 }
  0xa1   : > { %v1063_v31 = vunpack.i.h.bf16 %v1061_v28  ;;  %v1062_v32 = vunpack.i.l.bf16 %v1061_v28 }
  0xa2   : > { %v576_v33 = vsel %vm573_vm5, %v567_v29, %v1057_v27  ;;  %v577_v36 = vsel %vm573_vm5, %v568_v30, %v1058_v26 }
  0xa3   : > { %v1066_v37 = vpop.permute.xlu0 %1065  ;;  %v585_v41 = vsel %vm582_vm6, %v576_v33, %v1062_v32  ;;  %v586_v42 = vsel %vm582_vm6, %v577_v36, %v1063_v31 }
  0xa4   : > { %v1068_v38 = vunpack.i.h.bf16 %v1066_v37  ;;  %v1067_v39 = vunpack.i.l.bf16 %v1066_v37  ;;  %v1071_v40 = vpop.permute.xlu1 %1070 }
  0xa5   : > { %v1073_v43 = vunpack.i.h.bf16 %v1071_v40  ;;  %v1072_v44 = vunpack.i.l.bf16 %v1071_v40 }
  0xa6   : > { %v594_v45 = vsel %vm591_vm7, %v585_v41, %v1067_v39  ;;  %v595_v46 = vsel %vm591_vm7, %v586_v42, %v1068_v38 }
  0xa7   : > { %v603_v47 = vsel %vm600_vm8, %v594_v45, %v1072_v44  ;;  %v604_v48 = vsel %vm600_vm8, %v595_v46, %v1073_v43  ;;  %v1076_v49 = vpop.permute.xlu0 %1075 }
  0xa8   : > { %v942_v50 = vpack.c.bf16 %v604_v48, %v603_v47  ;;  %v1078_v14 = vunpack.i.h.bf16 %v1076_v49  ;;  %v1077_v51 = vunpack.i.l.bf16 %v1076_v49  ;;  %v1081_v52 = vpop.permute.xlu1 %1080 }
  0xa9   : > { %v1083_v53 = vunpack.i.h.bf16 %v1081_v52  ;;  %v1082_v56 = vunpack.i.l.bf16 %v1081_v52 }
  0xaa   : > { %v542_v57 = vsel %vm537_vm1, %v1277_v35, %v1077_v51  ;;  %v543_v58 = vsel %vm537_vm1, %v1300_v54, %v1078_v14  ;;  %944 = vmatprep.subr.msk.bf16.mxu0 %vm1368_vm9, %v942_v50 }
  0xab   : > { %v1086_v59 = vpop.permute.xlu0 %1085  ;;  %947 = vmatpush3.bf16.xpose.msk.msra.mxu0 %vm1368_vm9, %v942_v50  ;;  %v551_v63 = vsel %vm546_vm2, %v542_v57, %v1082_v56  ;;  %v552_v0 = vsel %vm546_vm2, %v543_v58, %v1083_v53 }
  0xac   : > { %v1088_v60 = vunpack.i.h.bf16 %v1086_v59  ;;  %v1087_v61 = vunpack.i.l.bf16 %v1086_v59  ;;  %v1091_v62 = vpop.permute.xlu1 %1090 }
  0xad   : > { %v1093_v1 = vunpack.i.h.bf16 %v1091_v62  ;;  %v1092_v2 = vunpack.i.l.bf16 %v1091_v62 }
  0xae   : > { %v560_v35 = vsel %vm555_vm3, %v551_v63, %v1087_v61  ;;  %v561_v54 = vsel %vm555_vm3, %v552_v0, %v1088_v60 }
  0xaf   : > { %v1096_v3 = vpop.permute.xlu0 %1095  ;;  %v569_v8 = vsel %vm564_vm4, %v560_v35, %v1092_v2  ;;  %v570_v9 = vsel %vm564_vm4, %v561_v54, %v1093_v1 }
  0xb0   : > { %v1098_v4 = vunpack.i.h.bf16 %v1096_v3  ;;  %v1097_v6 = vunpack.i.l.bf16 %v1096_v3  ;;  %v1101_v7 = vpop.permute.xlu1 %1100 }
  0xb1   : > { %v1103_v11 = vunpack.i.h.bf16 %v1101_v7  ;;  %v1102_v12 = vunpack.i.l.bf16 %v1101_v7 }
  0xb2   : > { %v578_v13 = vsel %vm573_vm5, %v569_v8, %v1097_v6  ;;  %v579_v16 = vsel %vm573_vm5, %v570_v9, %v1098_v4  ;;  %v610_v4 = vld [vmem:[%s1462_s1 + $0x8] sm:$0xff] }
  0xb3   : > { %v1106_v17 = vpop.permute.xlu0 %1105  ;;  %v587_v21 = vsel %vm582_vm6, %v578_v13, %v1102_v12  ;;  %v588_v22 = vsel %vm582_vm6, %v579_v16, %v1103_v11 }
  0xb4   : > { %v1108_v18 = vunpack.i.h.bf16 %v1106_v17  ;;  %v1107_v19 = vunpack.i.l.bf16 %v1106_v17  ;;  %v1111_v20 = vpop.permute.xlu1 %1110 }
  0xb5   : > { %v1113_v23 = vunpack.i.h.bf16 %v1111_v20  ;;  %v1112_v24 = vunpack.i.l.bf16 %v1111_v20 }
  0xb6   : > { %v596_v15 = vsel %vm591_vm7, %v587_v21, %v1107_v19  ;;  %v597_v34 = vsel %vm591_vm7, %v588_v22, %v1108_v18 }
  0xb7   : > { %v605_v25 = vsel %vm600_vm8, %v596_v15, %v1112_v24  ;;  %v606_v26 = vsel %vm600_vm8, %v597_v34, %v1113_v23  ;;  %v1116_v27 = vpop.permute.xlu0 %1115 }
  0xb8   : > { %v948_v28 = vpack.c.bf16 %v606_v26, %v605_v25  ;;  %v1118_v29 = vunpack.i.h.bf16 %v1116_v27  ;;  %v1117_v30 = vunpack.i.l.bf16 %v1116_v27  ;;  %v1121_v31 = vpop.permute.xlu1 %1120 }
  0xb9   : > { %v1123_v32 = vunpack.i.h.bf16 %v1121_v31  ;;  %v1122_v33 = vunpack.i.l.bf16 %v1121_v31 }
  0xba   : > { %v544_v36 = vsel %vm537_vm1, %v1303_v55, %v1117_v30  ;;  %v545_v37 = vsel %vm537_vm1, %v1326_v10, %v1118_v29  ;;  %950 = vmatprep.subr.msk.bf16.mxu0 %vm1368_vm9, %v948_v28 }
  0xbb   : > { %v1126_v38 = vpop.permute.xlu0 %1125  ;;  %953 = vmatpush3.bf16.xpose.msk.msra.mxu0 %vm1368_vm9, %v948_v28  ;;  %v553_v42 = vsel %vm546_vm2, %v544_v36, %v1122_v33  ;;  %v554_v43 = vsel %vm546_vm2, %v545_v37, %v1123_v32 }
  0xbc   : > { %v1128_v39 = vunpack.i.h.bf16 %v1126_v38  ;;  %v1127_v40 = vunpack.i.l.bf16 %v1126_v38  ;;  %v1131_v41 = vpop.permute.xlu1 %1130 }
  0xbd   : > { %v1133_v44 = vunpack.i.h.bf16 %v1131_v41  ;;  %v1132_v45 = vunpack.i.l.bf16 %v1131_v41 }
  0xbe   : > { %v562_v55 = vsel %vm555_vm3, %v553_v42, %v1127_v40  ;;  %v563_v10 = vsel %vm555_vm3, %v554_v43, %v1128_v39 }
  0xbf   : > { %v1136_v46 = vpop.permute.xlu0 %1135  ;;  %v571_v50 = vsel %vm564_vm4, %v562_v55, %v1132_v45  ;;  %v572_v14 = vsel %vm564_vm4, %v563_v10, %v1133_v44 }
  0xc0   : > { %v1138_v47 = vunpack.i.h.bf16 %v1136_v46  ;;  %v1137_v48 = vunpack.i.l.bf16 %v1136_v46  ;;  %v1141_v49 = vpop.permute.xlu1 %1140 }
  0xc1   : > { %v1143_v51 = vunpack.i.h.bf16 %v1141_v49  ;;  %v1142_v52 = vunpack.i.l.bf16 %v1141_v49 }
  0xc2   : > { %v580_v53 = vsel %vm573_vm5, %v571_v50, %v1137_v48  ;;  %v581_v56 = vsel %vm573_vm5, %v572_v14, %v1138_v47 }
  0xc3   : > { %v1146_v57 = vpop.permute.xlu0 %1145  ;;  %v589_v61 = vsel %vm582_vm6, %v580_v53, %v1142_v52  ;;  %v590_v62 = vsel %vm582_vm6, %v581_v56, %v1143_v51 }
  0xc4   : > { %v1148_v58 = vunpack.i.h.bf16 %v1146_v57  ;;  %v1147_v59 = vunpack.i.l.bf16 %v1146_v57  ;;  %v1151_v60 = vpop.permute.xlu1 %1150 }
  0xc5   : > { %v1153_v63 = vunpack.i.h.bf16 %v1151_v60  ;;  %v1152_v0 = vunpack.i.l.bf16 %v1151_v60 }
  0xc6   : > { %v598_v1 = vsel %vm591_vm7, %v589_v61, %v1147_v59  ;;  %v599_v2 = vsel %vm591_vm7, %v590_v62, %v1148_v58 }
  0xc7   : > { %v607_v35 = vsel %vm600_vm8, %v598_v1, %v1152_v0  ;;  %v608_v54 = vsel %vm600_vm8, %v599_v2, %v1153_v63 }
  0xc8   : > { %v954_v3 = vpack.c.bf16 %v608_v54, %v607_v35 }
  0xca   : > { %956 = vmatprep.subr.msk.bf16.mxu0 %vm1368_vm9, %v954_v3 }
  0xcb   : > { %959 = vmatpush3.bf16.xpose.msk.msra.mxu0 %vm1368_vm9, %v954_v3 }
  0xd2   : > { %934 = vmatmul.mubr.msk.f32.vlgmr.msra.gmra.mrb[0].mxu0 %vm623_vm0, %v610_v4 }
  0xd4   : > { %v616_v7 = vpop.permute.xlu0 %615 }
  0xd5   : > { %v621_v6 = vpop.permute.xlu1 %620 }
 0x1a5   : > { %v935_v8 = vpop.f32.mrb[0].mxu0 }
 0x1a6   : > { %v726_v9 = vadd.f32 %v935_v8, %v621_v6  ;;  %v720_v11 = vpop.f32.mrb[1].mxu0 }
 0x1a7   : > { %v721_v12 = vadd.f32 %v720_v11, %v616_v7 }
 0x1a8   : > { %730 = vst.msk [vmem:[%s190_s16 + $0x8] sm:$0xff] %vm600_vm8, %v726_v9 }
 0x1a9   : > { %729 = vst.msk [vmem:[%s190_s16] sm:$0xff] %vm600_vm8, %v721_v12 }
 0x1aa PF: > { %s13_s14 = sadd.s32 1, %s1178_s14   ;;  %s1467_s12 = smov %s1174_s13 }
 0x1ab   : > { %p10_p5 = scmp.ge.s32.totalorder %s13_s14, 4   ;;  %s1468_s13 = smov %s1470_s15 }
 0x1ad   :  { %12 = sbr.rel (!%p10_p5) target bundleno = 2 (0x2), region = 68 }

</bundles_post_ra>
